<compile_context>
chip_gen: v7x
topology: tpu7x:2x2x1
jax: 0.10.0
libtpu: 0.0.40
codegen_flags: <defaults>
</compile_context>

<pallas_src>
import math

import numpy as np

import jax
import jax.numpy as jnp
from jax.experimental import pallas as pl
from jax.experimental.pallas import tpu as pltpu

EPS = 1e-5


# ---------------------------------------------------------------------------
# Constant-matrix builders (host-side; become XLA literals).
# ---------------------------------------------------------------------------

def _row_shift_mats(n, h):
    """(R,R) matrices selecting the previous / next image row (zero at H borders)."""
    r = n * h
    up = np.zeros((r, r), np.float32)
    dn = np.zeros((r, r), np.float32)
    for ni in range(n):
        for hi in range(h):
            ri = ni * h + hi
            if hi > 0:
                up[ri, ri - 1] = 1.0
            if hi < h - 1:
                dn[ri, ri + 1] = 1.0
    return jnp.asarray(up), jnp.asarray(dn)


def _bn_channel_proj(w, c):
    """(W*C, W*C) projection: per-(w,c)-lane stats -> per-channel stats bcast over W."""
    p = np.kron(np.ones((w, w), np.float32) / np.float32(w),
                np.eye(c, dtype=np.float32))
    return jnp.asarray(p)


def _pool_select_mats(n, h, w, c):
    """Exact 0/1 selection matrices implementing 2x2 max-pool via matmuls."""
    ho, wo = h // 2, w // 2
    re = np.zeros((n * ho, n * h), np.float32)
    ro = np.zeros((n * ho, n * h), np.float32)
    for ni in range(n):
        for hi in range(ho):
            re[ni * ho + hi, ni * h + 2 * hi] = 1.0
            ro[ni * ho + hi, ni * h + 2 * hi + 1] = 1.0
    ce = np.zeros((w * c, wo * c), np.float32)
    co = np.zeros((w * c, wo * c), np.float32)
    for wi in range(wo):
        for ci in range(c):
            ce[(2 * wi) * c + ci, wi * c + ci] = 1.0
            co[(2 * wi + 1) * c + ci, wi * c + ci] = 1.0
    return jnp.asarray(re), jnp.asarray(ro), jnp.asarray(ce), jnp.asarray(co)


def _toeplitz_conv_weight(w_oihw, w):
    """(Cout,Cin,3,3) -> (3*W*Cin, W*Cout) banded matrix folding kx taps + W padding.

    Row index = ky*(W*Cin) + w_in*Cin + ci, column index = w_out*Cout + co.
    Entry = weight[co, ci, ky, w_in - w_out + 1] when that kx tap is in range,
    else 0 (which is exactly the zero padding along W).
    """
    cout, cin, _, _ = w_oihw.shape
    wtap = jnp.transpose(w_oihw, (2, 3, 1, 0)).astype(jnp.float32)  # (ky,kx,ci,co)
    sel = np.zeros((3, w, w), np.float32)                           # sel[kx, w_in, w_out]
    for kx in range(3):
        for wout in range(w):
            win = wout + kx - 1
            if 0 <= win < w:
                sel[kx, win, wout] = 1.0
    wk = jnp.einsum("kiw,ykco->yicwo", jnp.asarray(sel), wtap)
    return wk.reshape(3 * w * cin, w * cout)


# ---------------------------------------------------------------------------
# Fused ResNetBlock kernel (conv+BN+ReLU x2, optional trailing 2x2 maxpool).
# ---------------------------------------------------------------------------

def _make_block_kernel(pool):
    def kernel(x_ref, w1_ref, g1_ref, be1_ref, w2_ref, g2_ref, be2_ref,
               up_ref, dn_ref, p_ref, *rest):
        if pool:
            re_ref, ro_ref, ce_ref, co_ref, o_ref = rest
        else:
            (o_ref,) = rest

        up = up_ref[...]
        dn = dn_ref[...]
        proj = p_ref[...]

        def conv_bn_relu(a, w_ref, g_ref, be_ref):
            # ky=0 / ky=2 row taps via tiny shift matmuls (absorb H zero-padding);
            # kx taps + W zero-padding live in the banded weight, so the whole
            # 3x3 conv is ONE MXU matmul with K = 3*W*Cin, N = W*Cout.
            a3 = jnp.concatenate(
                [jnp.dot(up, a, preferred_element_type=jnp.float32),
                 a,
                 jnp.dot(dn, a, preferred_element_type=jnp.float32)],
                axis=-1)
            y = jnp.dot(a3, w_ref[...], preferred_element_type=jnp.float32)
            # BatchNorm2d, training-mode batch stats (biased variance, eps=1e-5).
            # Per-channel stats = per-lane stats projected by `proj` (averages the
            # W positions that share a channel, broadcast back over the lane axis).
            mean_c = jnp.dot(jnp.mean(y, axis=0, keepdims=True), proj,
                             preferred_element_type=jnp.float32)
            cent = y - mean_c
            var_c = jnp.dot(jnp.mean(cent * cent, axis=0, keepdims=True), proj,
                            preferred_element_type=jnp.float32)
            y = cent * jax.lax.rsqrt(var_c + EPS) * g_ref[...] + be_ref[...]
            return jnp.maximum(y, 0.0)  # ReLU

        y = conv_bn_relu(x_ref[...].astype(jnp.float32), w1_ref, g1_ref, be1_ref)
        y = conv_bn_relu(y, w2_ref, g2_ref, be2_ref)

        if pool:
            # 2x2 MaxPool fused into the epilogue: exact even/odd row and
            # even/odd W-position selections + elementwise max of the 4 views.
            rmax = jnp.maximum(
                jnp.dot(re_ref[...], y, preferred_element_type=jnp.float32),
                jnp.dot(ro_ref[...], y, preferred_element_type=jnp.float32))
            y = jnp.maximum(
                jnp.dot(rmax, ce_ref[...], preferred_element_type=jnp.float32),
                jnp.dot(rmax, co_ref[...], preferred_element_type=jnp.float32))

        o_ref[...] = y.astype(o_ref.dtype)

    return kernel


def resnet_block_fused(x_slab, n, h, w, blk, pool):
    """One fused ResNetBlock (+ optional 2x2 maxpool) as a single pallas_call.

    x_slab: (N*H, W*Cin) f32 lane-dense slab (NHWC flattened, contiguous).
    Returns (y_slab, H_out, W_out) with y_slab: (N*H_out, W_out*Cout).
    """
    cout = blk["w1"].shape[0]
    wk1 = _toeplitz_conv_weight(blk["w1"], w)   # (3*W*Cin,  W*Cout)
    wk2 = _toeplitz_conv_weight(blk["w2"], w)   # (3*W*Cout, W*Cout)
    up, dn = _row_shift_mats(n, h)
    proj = _bn_channel_proj(w, cout)
    g1 = jnp.tile(blk["g1"].astype(jnp.float32), w).reshape(1, w * cout)
    be1 = jnp.tile(blk["be1"].astype(jnp.float32), w).reshape(1, w * cout)
    g2 = jnp.tile(blk["g2"].astype(jnp.float32), w).reshape(1, w * cout)
    be2 = jnp.tile(blk["be2"].astype(jnp.float32), w).reshape(1, w * cout)
    # NOTE: conv biases blk["b1"]/blk["b2"] are intentionally NOT applied:
    # BN's per-channel mean subtraction cancels a per-channel constant exactly.

    inputs = [x_slab, wk1, g1, be1, wk2, g2, be2, up, dn, proj]
    if pool:
        inputs += list(_pool_select_mats(n, h, w, cout))
        h_out, w_out = h // 2, w // 2
    else:
        h_out, w_out = h, w

    vmem = pl.BlockSpec(memory_space=pltpu.MemorySpace.VMEM)
    y = pl.pallas_call(
        _make_block_kernel(pool),
        out_shape=jax.ShapeDtypeStruct((n * h_out, w_out * cout), jnp.float32),
        in_specs=[vmem] * len(inputs),
        out_specs=vmem,
    )(*inputs)
    return y, h_out, w_out


def resnet_block_layer_forward(x_nchw, params):
    """ResNetBlockLayer.forward: blocks[0] -> maxpool(2) -> blocks[1:]."""
    n, cin, h, w = x_nchw.shape
    # NCHW -> NHWC -> lane-dense (N*H, W*C) slab (channels on the fast lane axis).
    x = jnp.transpose(x_nchw, (0, 2, 3, 1)).reshape(n * h, w * cin)
    c = cin
    for i, blk in enumerate(params):
        x, h, w = resnet_block_fused(x, n, h, w, blk, pool=(i == 0))
        c = blk["w1"].shape[0]
    # slab -> NHWC -> NCHW
    return jnp.transpose(x.reshape(n, h, w, c), (0, 3, 1, 2))


def init_conv(key, cin, cout):
    """Deterministic Conv2d-style init: U(-1/sqrt(fan_in), 1/sqrt(fan_in))."""
    k1, k2 = jax.random.split(key)
    fan_in = cin * 3 * 3
    bound = 1.0 / math.sqrt(fan_in)
    w = jax.random.uniform(k1, (cout, cin, 3, 3), jnp.float32, -bound, bound)
    b = jax.random.uniform(k2, (cout,), jnp.float32, -bound, bound)
    return w, b


if __name__ == "__main__":
    key = jax.random.PRNGKey(0)

    # Module config: ResNetBlockLayer(block_count=2, in_size=(16,16),
    #                                 in_channels=4, out_channels=8)
    block_count = 2
    in_size = (16, 16)
    in_channels, out_channels = 4, 8
    batch = 2

    keys = jax.random.split(key, 1 + 2 * block_count)
    x = jax.random.normal(keys[0], (batch, in_channels, *in_size), jnp.float32)

    params = []
    cin = in_channels
    ki = 1
    for _ in range(block_count):
        w1, b1 = init_conv(keys[ki], cin, out_channels); ki += 1
        w2, b2 = init_conv(keys[ki], out_channels, out_channels); ki += 1
        params.append(dict(
            w1=w1, b1=b1,
            g1=jnp.ones((out_channels,), jnp.float32),
            be1=jnp.zeros((out_channels,), jnp.float32),
            w2=w2, b2=b2,
            g2=jnp.ones((out_channels,), jnp.float32),
            be2=jnp.zeros((out_channels,), jnp.float32),
        ))
        cin = out_channels

    y = resnet_block_layer_forward(x, params)
    jax.block_until_ready(y)
    assert y.shape == (batch, out_channels, in_size[0] // 2, in_size[1] // 2), y.shape
    print("KERNEL_OK")
</pallas_src>

<mosaic_0001>
module attributes {stable_mosaic.version = 11 : i64} {
  func.func @kernel(%arg0: memref<32x64xf32, #tpu.memory_space<vmem>>, %arg1: memref<192x128xf32, #tpu.memory_space<vmem>>, %arg2: memref<1x128xf32, #tpu.memory_space<vmem>>, %arg3: memref<1x128xf32, #tpu.memory_space<vmem>>, %arg4: memref<384x128xf32, #tpu.memory_space<vmem>>, %arg5: memref<1x128xf32, #tpu.memory_space<vmem>>, %arg6: memref<1x128xf32, #tpu.memory_space<vmem>>, %arg7: memref<32x32xf32, #tpu.memory_space<vmem>>, %arg8: memref<32x32xf32, #tpu.memory_space<vmem>>, %arg9: memref<128x128xf32, #tpu.memory_space<vmem>>, %arg10: memref<16x32xf32, #tpu.memory_space<vmem>>, %arg11: memref<16x32xf32, #tpu.memory_space<vmem>>, %arg12: memref<128x64xf32, #tpu.memory_space<vmem>>, %arg13: memref<128x64xf32, #tpu.memory_space<vmem>>, %arg14: memref<16x64xf32, #tpu.memory_space<vmem>>) attributes {dimension_semantics = [], scalar_prefetch = 0 : i64, scratch_operands = 0 : i64, tpu.core_type = #tpu.core_type<tc>} {
    %c0 = arith.constant 0 : index
    %c0_0 = arith.constant 0 : index
    %0 = vector.load %arg7[%c0, %c0_0] : memref<32x32xf32, #tpu.memory_space<vmem>>, vector<32x32xf32>
    %c0_1 = arith.constant 0 : index
    %c0_2 = arith.constant 0 : index
    %1 = vector.load %arg8[%c0_1, %c0_2] : memref<32x32xf32, #tpu.memory_space<vmem>>, vector<32x32xf32>
    %c0_3 = arith.constant 0 : index
    %c0_4 = arith.constant 0 : index
    %2 = vector.load %arg9[%c0_3, %c0_4] : memref<128x128xf32, #tpu.memory_space<vmem>>, vector<128x128xf32>
    %c0_5 = arith.constant 0 : index
    %c0_6 = arith.constant 0 : index
    %3 = vector.load %arg0[%c0_5, %c0_6] : memref<32x64xf32, #tpu.memory_space<vmem>>, vector<32x64xf32>
    %cst = arith.constant dense<0.000000e+00> : vector<32x64xf32>
    %4 = tpu.matmul %0, %3, %cst {dimension_numbers = #tpu.dot_dimension_numbers<[1], [0], [0], [1], [0, 0, 1, 1], [], []>} : vector<32x32xf32>, vector<32x64xf32>, vector<32x64xf32> -> vector<32x64xf32>
    %cst_7 = arith.constant dense<0.000000e+00> : vector<32x64xf32>
    %5 = tpu.matmul %1, %3, %cst_7 {dimension_numbers = #tpu.dot_dimension_numbers<[1], [0], [0], [1], [0, 0, 1, 1], [], []>} : vector<32x32xf32>, vector<32x64xf32>, vector<32x64xf32> -> vector<32x64xf32>
    %6 = tpu.concatenate %4, %3, %5 in 1 : vector<32x64xf32>, vector<32x64xf32>, vector<32x64xf32> -> vector<32x192xf32>
    %c0_8 = arith.constant 0 : index
    %c0_9 = arith.constant 0 : index
    %7 = vector.load %arg1[%c0_8, %c0_9] : memref<192x128xf32, #tpu.memory_space<vmem>>, vector<192x128xf32>
    %cst_10 = arith.constant dense<0.000000e+00> : vector<32x128xf32>
    %8 = tpu.matmul %6, %7, %cst_10 {dimension_numbers = #tpu.dot_dimension_numbers<[1], [0], [0], [1], [0, 0, 1, 1], [], []>} : vector<32x192xf32>, vector<192x128xf32>, vector<32x128xf32> -> vector<32x128xf32>
    %cst_11 = arith.constant dense<0.000000e+00> : vector<128xf32>
    %9 = vector.multi_reduction <add>, %8, %cst_11 [0] : vector<32x128xf32> to vector<128xf32>
    %10 = vector.shape_cast %9 : vector<128xf32> to vector<1x128xf32>
    %cst_12 = arith.constant 3.200000e+01 : f32
    %11 = vector.broadcast %cst_12 : f32 to vector<1x128xf32>
    %12 = arith.divf %10, %11 : vector<1x128xf32>
    %cst_13 = arith.constant dense<0.000000e+00> : vector<1x128xf32>
    %13 = tpu.matmul %12, %2, %cst_13 {dimension_numbers = #tpu.dot_dimension_numbers<[1], [0], [0], [1], [0, 0, 1, 1], [], []>} : vector<1x128xf32>, vector<128x128xf32>, vector<1x128xf32> -> vector<1x128xf32>
    %14 = vector.broadcast %13 : vector<1x128xf32> to vector<32x128xf32>
    %15 = arith.subf %8, %14 : vector<32x128xf32>
    %16 = arith.mulf %15, %15 : vector<32x128xf32>
    %cst_14 = arith.constant dense<0.000000e+00> : vector<128xf32>
    %17 = vector.multi_reduction <add>, %16, %cst_14 [0] : vector<32x128xf32> to vector<128xf32>
    %18 = vector.shape_cast %17 : vector<128xf32> to vector<1x128xf32>
    %cst_15 = arith.constant 3.200000e+01 : f32
    %19 = vector.broadcast %cst_15 : f32 to vector<1x128xf32>
    %20 = arith.divf %18, %19 : vector<1x128xf32>
    %cst_16 = arith.constant dense<0.000000e+00> : vector<1x128xf32>
    %21 = tpu.matmul %20, %2, %cst_16 {dimension_numbers = #tpu.dot_dimension_numbers<[1], [0], [0], [1], [0, 0, 1, 1], [], []>} : vector<1x128xf32>, vector<128x128xf32>, vector<1x128xf32> -> vector<1x128xf32>
    %cst_17 = arith.constant 9.99999974E-6 : f32
    %22 = vector.broadcast %cst_17 : f32 to vector<1x128xf32>
    %23 = arith.addf %21, %22 : vector<1x128xf32>
    %24 = math.rsqrt %23 : vector<1x128xf32>
    %25 = vector.broadcast %24 : vector<1x128xf32> to vector<32x128xf32>
    %26 = arith.mulf %15, %25 : vector<32x128xf32>
    %c0_18 = arith.constant 0 : index
    %c0_19 = arith.constant 0 : index
    %27 = vector.load %arg2[%c0_18, %c0_19] : memref<1x128xf32, #tpu.memory_space<vmem>>, vector<1x128xf32>
    %28 = vector.broadcast %27 : vector<1x128xf32> to vector<32x128xf32>
    %29 = arith.mulf %26, %28 : vector<32x128xf32>
    %c0_20 = arith.constant 0 : index
    %c0_21 = arith.constant 0 : index
    %30 = vector.load %arg3[%c0_20, %c0_21] : memref<1x128xf32, #tpu.memory_space<vmem>>, vector<1x128xf32>
    %31 = vector.broadcast %30 : vector<1x128xf32> to vector<32x128xf32>
    %32 = arith.addf %29, %31 : vector<32x128xf32>
    %cst_22 = arith.constant 0.000000e+00 : f32
    %33 = vector.broadcast %cst_22 : f32 to vector<32x128xf32>
    %34 = arith.maximumf %32, %33 : vector<32x128xf32>
    %cst_23 = arith.constant dense<0.000000e+00> : vector<32x128xf32>
    %35 = tpu.matmul %0, %34, %cst_23 {dimension_numbers = #tpu.dot_dimension_numbers<[1], [0], [0], [1], [0, 0, 1, 1], [], []>} : vector<32x32xf32>, vector<32x128xf32>, vector<32x128xf32> -> vector<32x128xf32>
    %cst_24 = arith.constant dense<0.000000e+00> : vector<32x128xf32>
    %36 = tpu.matmul %1, %34, %cst_24 {dimension_numbers = #tpu.dot_dimension_numbers<[1], [0], [0], [1], [0, 0, 1, 1], [], []>} : vector<32x32xf32>, vector<32x128xf32>, vector<32x128xf32> -> vector<32x128xf32>
    %37 = tpu.concatenate %35, %34, %36 in 1 : vector<32x128xf32>, vector<32x128xf32>, vector<32x128xf32> -> vector<32x384xf32>
    %c0_25 = arith.constant 0 : index
    %c0_26 = arith.constant 0 : index
    %38 = vector.load %arg4[%c0_25, %c0_26] : memref<384x128xf32, #tpu.memory_space<vmem>>, vector<384x128xf32>
    %cst_27 = arith.constant dense<0.000000e+00> : vector<32x128xf32>
    %39 = tpu.matmul %37, %38, %cst_27 {dimension_numbers = #tpu.dot_dimension_numbers<[1], [0], [0], [1], [0, 0, 1, 1], [], []>} : vector<32x384xf32>, vector<384x128xf32>, vector<32x128xf32> -> vector<32x128xf32>
    %cst_28 = arith.constant dense<0.000000e+00> : vector<128xf32>
    %40 = vector.multi_reduction <add>, %39, %cst_28 [0] : vector<32x128xf32> to vector<128xf32>
    %41 = vector.shape_cast %40 : vector<128xf32> to vector<1x128xf32>
    %cst_29 = arith.constant 3.200000e+01 : f32
    %42 = vector.broadcast %cst_29 : f32 to vector<1x128xf32>
    %43 = arith.divf %41, %42 : vector<1x128xf32>
    %cst_30 = arith.constant dense<0.000000e+00> : vector<1x128xf32>
    %44 = tpu.matmul %43, %2, %cst_30 {dimension_numbers = #tpu.dot_dimension_numbers<[1], [0], [0], [1], [0, 0, 1, 1], [], []>} : vector<1x128xf32>, vector<128x128xf32>, vector<1x128xf32> -> vector<1x128xf32>
    %45 = vector.broadcast %44 : vector<1x128xf32> to vector<32x128xf32>
    %46 = arith.subf %39, %45 : vector<32x128xf32>
    %47 = arith.mulf %46, %46 : vector<32x128xf32>
    %cst_31 = arith.constant dense<0.000000e+00> : vector<128xf32>
    %48 = vector.multi_reduction <add>, %47, %cst_31 [0] : vector<32x128xf32> to vector<128xf32>
    %49 = vector.shape_cast %48 : vector<128xf32> to vector<1x128xf32>
    %cst_32 = arith.constant 3.200000e+01 : f32
    %50 = vector.broadcast %cst_32 : f32 to vector<1x128xf32>
    %51 = arith.divf %49, %50 : vector<1x128xf32>
    %cst_33 = arith.constant dense<0.000000e+00> : vector<1x128xf32>
    %52 = tpu.matmul %51, %2, %cst_33 {dimension_numbers = #tpu.dot_dimension_numbers<[1], [0], [0], [1], [0, 0, 1, 1], [], []>} : vector<1x128xf32>, vector<128x128xf32>, vector<1x128xf32> -> vector<1x128xf32>
    %cst_34 = arith.constant 9.99999974E-6 : f32
    %53 = vector.broadcast %cst_34 : f32 to vector<1x128xf32>
    %54 = arith.addf %52, %53 : vector<1x128xf32>
    %55 = math.rsqrt %54 : vector<1x128xf32>
    %56 = vector.broadcast %55 : vector<1x128xf32> to vector<32x128xf32>
    %57 = arith.mulf %46, %56 : vector<32x128xf32>
    %c0_35 = arith.constant 0 : index
    %c0_36 = arith.constant 0 : index
    %58 = vector.load %arg5[%c0_35, %c0_36] : memref<1x128xf32, #tpu.memory_space<vmem>>, vector<1x128xf32>
    %59 = vector.broadcast %58 : vector<1x128xf32> to vector<32x128xf32>
    %60 = arith.mulf %57, %59 : vector<32x128xf32>
    %c0_37 = arith.constant 0 : index
    %c0_38 = arith.constant 0 : index
    %61 = vector.load %arg6[%c0_37, %c0_38] : memref<1x128xf32, #tpu.memory_space<vmem>>, vector<1x128xf32>
    %62 = vector.broadcast %61 : vector<1x128xf32> to vector<32x128xf32>
    %63 = arith.addf %60, %62 : vector<32x128xf32>
    %cst_39 = arith.constant 0.000000e+00 : f32
    %64 = vector.broadcast %cst_39 : f32 to vector<32x128xf32>
    %65 = arith.maximumf %63, %64 : vector<32x128xf32>
    %c0_40 = arith.constant 0 : index
    %c0_41 = arith.constant 0 : index
    %66 = vector.load %arg10[%c0_40, %c0_41] : memref<16x32xf32, #tpu.memory_space<vmem>>, vector<16x32xf32>
    %cst_42 = arith.constant dense<0.000000e+00> : vector<16x128xf32>
    %67 = tpu.matmul %66, %65, %cst_42 {dimension_numbers = #tpu.dot_dimension_numbers<[1], [0], [0], [1], [0, 0, 1, 1], [], []>} : vector<16x32xf32>, vector<32x128xf32>, vector<16x128xf32> -> vector<16x128xf32>
    %c0_43 = arith.constant 0 : index
    %c0_44 = arith.constant 0 : index
    %68 = vector.load %arg11[%c0_43, %c0_44] : memref<16x32xf32, #tpu.memory_space<vmem>>, vector<16x32xf32>
    %cst_45 = arith.constant dense<0.000000e+00> : vector<16x128xf32>
    %69 = tpu.matmul %68, %65, %cst_45 {dimension_numbers = #tpu.dot_dimension_numbers<[1], [0], [0], [1], [0, 0, 1, 1], [], []>} : vector<16x32xf32>, vector<32x128xf32>, vector<16x128xf32> -> vector<16x128xf32>
    %70 = arith.maximumf %67, %69 : vector<16x128xf32>
    %c0_46 = arith.constant 0 : index
    %c0_47 = arith.constant 0 : index
    %71 = vector.load %arg12[%c0_46, %c0_47] : memref<128x64xf32, #tpu.memory_space<vmem>>, vector<128x64xf32>
    %cst_48 = arith.constant dense<0.000000e+00> : vector<16x64xf32>
    %72 = tpu.matmul %70, %71, %cst_48 {dimension_numbers = #tpu.dot_dimension_numbers<[1], [0], [0], [1], [0, 0, 1, 1], [], []>} : vector<16x128xf32>, vector<128x64xf32>, vector<16x64xf32> -> vector<16x64xf32>
    %c0_49 = arith.constant 0 : index
    %c0_50 = arith.constant 0 : index
    %73 = vector.load %arg13[%c0_49, %c0_50] : memref<128x64xf32, #tpu.memory_space<vmem>>, vector<128x64xf32>
    %cst_51 = arith.constant dense<0.000000e+00> : vector<16x64xf32>
    %74 = tpu.matmul %70, %73, %cst_51 {dimension_numbers = #tpu.dot_dimension_numbers<[1], [0], [0], [1], [0, 0, 1, 1], [], []>} : vector<16x128xf32>, vector<128x64xf32>, vector<16x64xf32> -> vector<16x64xf32>
    %75 = arith.maximumf %72, %74 : vector<16x64xf32>
    %c0_52 = arith.constant 0 : index
    %c0_53 = arith.constant 0 : index
    %76 = vector.load %arg14[%c0_52, %c0_53] : memref<16x64xf32, #tpu.memory_space<vmem>>, vector<16x64xf32>
    tpu.vector_store %arg14[%c0_52, %c0_53], %75 {strides = array<i32>} : memref<16x64xf32, #tpu.memory_space<vmem>>, vector<16x64xf32>,
    return
  }
}

</mosaic_0001>

<bundles_post_ra>
// kernel: tpu_custom_call.1
= control target key start
LH: loop header
LB: loop body
LE: loop exit
PB: predicated region body
PF: predicated region fallthrough
CT: control target
= control target key end

     0   :  { %19 = vsyncpa [#allocation3], 0  ;;  %s3351_s0 = inlined_call_operand.hbm [shape: f32[32,64], index: 0, kind: input, shape index: {}]   ;;  %s3352_s1 = inlined_call_operand.hbm [shape: f32[192,128], index: 1, kind: input, shape index: {}]   ;;  %s3353_s2 = inlined_call_operand.vmem [shape: f32[1,128], index: 2, kind: input, shape index: {}]   ;;  %s3354_s3 = inlined_call_operand.vmem [shape: f32[1,128], index: 3, kind: input, shape index: {}]   ;;  %s3355_s4 = inlined_call_operand.vmem [shape: f32[384,128], index: 4, kind: input, shape index: {}]   ;;  %s3356_s5 = inlined_call_operand.vmem [shape: f32[1,128], index: 5, kind: input, shape index: {}]   ;;  %s3357_s6 = inlined_call_operand.vmem [shape: f32[1,128], index: 6, kind: input, shape index: {}]   ;;  %s3358_s7 = inlined_call_operand.hbm [shape: f32[32,32], index: 7, kind: input, shape index: {}]   ;;  %s3359_s8 = inlined_call_operand.hbm [shape: f32[32,32], index: 8, kind: input, shape index: {}]   ;;  %s3360_s9 = inlined_call_operand.hbm [shape: f32[128,128], index: 9, kind: input, shape index: {}]   ;;  %s3361_s10 = inlined_call_operand.vmem [shape: f32[16,32], index: 10, kind: input, shape index: {}]   ;;  %s3362_s11 = inlined_call_operand.vmem [shape: f32[16,32], index: 11, kind: input, shape index: {}]   ;;  %s3363_s12 = inlined_call_operand.vmem [shape: f32[128,64], index: 12, kind: input, shape index: {}]   ;;  %s3364_s13 = inlined_call_operand.vmem [shape: f32[128,64], index: 13, kind: input, shape index: {}]   ;;  %s3365_s14 = inlined_call_operand.hbm [shape: f32[16,64], index: 14, kind: output, shape index: {}]  }
   0x1   :  { %20 = vsyncpa [#allocation6], 0 }
   0x2   :  { %21 = vsyncpa [#allocation9], 0 }
   0x3   :  { %22 = vsyncpa [#allocation4], 0  ;;  %s2687_s29 = smov [#allocation5]   ;;  %s2688_s15 = smov [#allocation8]  }
   0x4   :  { %s40_s30 = sshll.u32 %s2687_s29, 4  ;;  %s74_s16 = sshll.u32 %s2688_s15, 4  ;;  %s41_s30 = int_to_ptr.vmem [resolvable:$true] %s40_s30  ;;  %s2774_s16 = int_to_ptr.vmem [resolvable:$true] %s74_s16 }
   0x5   :  { %s2547_s19 = scalar_lea.hbm %s3352_s1, 3072 }
   0x6   :  { %p2548_p0 = scmp.ne.s32.totalorder %s3352_s1, %s2547_s19  ;;  %p2551_p1 = scmp.lt.u32.totalorder %s2547_s19, %s3352_s1 }
   0x8   :  { %p2553_p2 = pnand %p2551_p1, %p2548_p0 }
   0xa   :  { %2556 = shalt.err (!%p2553_p2)
}
   0xb   :  { %s2557_s24 = scalar_lea.vmem %s41_s30, 3072  ;;  %p2562_p4 = scmp.lt.s32.totalorder %s41_s30, %s41_s30 }
   0xc   :  { %p2558_p3 = scmp.ne.s32.totalorder %s41_s30, %s2557_s24  ;;  %p2563_p5 = scmp.lt.s32.totalorder %s2557_s24, %s2557_s24 }
   0xe   :  { %p2564_p6 = por %p2563_p5, %p2562_p4 }
  0x10   :  { %p2565_p7 = pnand %p2564_p6, %p2558_p3 }
  0x12   :  { %2568 = shalt.err (!%p2565_p7)
}
  0x13   :  { %s2689_s25 = smov 128   ;;  %s2690_s26 = smov 8  }
  0x14   :  { %46 = dma.hbm_to_vmem [thread:$0]  %s3352_s1, 3072, %s41_s30, [#allocation6], %s2689_s25, %s2689_s25, %s2690_s26  }
  0x15   :  { %s2569_s17 = scalar_lea.hbm %s3359_s8, 512 }
  0x16   :  { %p2570_p8 = scmp.ne.s32.totalorder %s3359_s8, %s2569_s17  ;;  %p2573_p9 = scmp.lt.u32.totalorder %s2569_s17, %s3359_s8 }
  0x18   :  { %p2575_p10 = pnand %p2573_p9, %p2570_p8 }
  0x1a   :  { %2578 = shalt.err (!%p2575_p10)
}
  0x1b   :  { %s2579_s22 = scalar_lea.vmem %s2774_s16, 512  ;;  %p2584_p12 = scmp.lt.s32.totalorder %s2774_s16, %s2774_s16 }
  0x1c   :  { %p2580_p11 = scmp.ne.s32.totalorder %s2774_s16, %s2579_s22  ;;  %p2585_p13 = scmp.lt.s32.totalorder %s2579_s22, %s2579_s22 }
  0x1e   :  { %p2586_p0 = por %p2585_p13, %p2584_p12 }
  0x20   :  { %p2587_p1 = pnand %p2586_p0, %p2580_p11 }
  0x22   :  { %2590 = shalt.err (!%p2587_p1)
}
  0x23   :  { %80 = dma.hbm_to_vmem [thread:$0]  %s3359_s8, 512, %s2774_s16, [#allocation9], %s2689_s25, %s2689_s25, %s2690_s26  }
  0x24   :  { %s2691_s23 = smov [#allocation2]   ;;  %s2692_s27 = smov [#allocation7]  }
  0x25   :  { %s28_s24 = sshll.u32 %s2691_s23, 4  ;;  %s62_s28 = sshll.u32 %s2692_s27, 4  ;;  %s29_s24 = int_to_ptr.vmem [resolvable:$true] %s28_s24  ;;  %s2811_s28 = int_to_ptr.vmem [resolvable:$true] %s62_s28 }
  0x26   :  { %s2591_s17 = scalar_lea.hbm %s3351_s0, 512 }
  0x27   :  { %p2592_p2 = scmp.ne.s32.totalorder %s3351_s0, %s2591_s17  ;;  %p2595_p3 = scmp.lt.u32.totalorder %s2591_s17, %s3351_s0 }
  0x29   :  { %p2597_p4 = pnand %p2595_p3, %p2592_p2 }
  0x2b   :  { %2600 = shalt.err (!%p2597_p4)
}
  0x2c   :  { %s2601_s8 = scalar_lea.vmem %s29_s24, 512  ;;  %p2606_p6 = scmp.lt.s32.totalorder %s29_s24, %s29_s24 }
  0x2d   :  { %p2602_p5 = scmp.ne.s32.totalorder %s29_s24, %s2601_s8  ;;  %p2607_p7 = scmp.lt.s32.totalorder %s2601_s8, %s2601_s8 }
  0x2f   :  { %p2608_p8 = por %p2607_p7, %p2606_p6 }
  0x31   :  { %p2609_p9 = pnand %p2608_p8, %p2602_p5 }
  0x33   :  { %2612 = shalt.err (!%p2609_p9)
}
  0x34   :  { %34 = dma.hbm_to_vmem [thread:$0]  %s3351_s0, 512, %s29_s24, [#allocation3], %s2689_s25, %s2689_s25, %s2690_s26  }
  0x35   :  { %s2613_s23 = scalar_lea.hbm %s3358_s7, 512 }
  0x36   :  { %p2614_p10 = scmp.ne.s32.totalorder %s3358_s7, %s2613_s23  ;;  %p2617_p11 = scmp.lt.u32.totalorder %s2613_s23, %s3358_s7 }
  0x38   :  { %p2619_p12 = pnand %p2617_p11, %p2614_p10 }
  0x3a   :  { %2622 = shalt.err (!%p2619_p12)
}
  0x3b   :  { %s2623_s18 = scalar_lea.vmem %s2811_s28, 512  ;;  %p2628_p0 = scmp.lt.s32.totalorder %s2811_s28, %s2811_s28 }
  0x3c   :  { %p2624_p13 = scmp.ne.s32.totalorder %s2811_s28, %s2623_s18  ;;  %p2629_p1 = scmp.lt.s32.totalorder %s2623_s18, %s2623_s18 }
  0x3e   :  { %p2630_p2 = por %p2629_p1, %p2628_p0 }
  0x40   :  { %p2631_p3 = pnand %p2630_p2, %p2624_p13 }
  0x42   :  { %2634 = shalt.err (!%p2631_p3)
}
  0x43   :  { %68 = dma.hbm_to_vmem [thread:$0]  %s3358_s7, 512, %s2811_s28, [#allocation6], %s2689_s25, %s2689_s25, %s2690_s26  }
  0x44   :  { %s2693_s19 = smov [#allocation10]   ;;  %s2635_s16 = scalar_lea.hbm %s3360_s9, 2048 }
  0x45   :  { %s86_s20 = sshll.u32 %s2693_s19, 4  ;;  %p2636_p4 = scmp.ne.s32.totalorder %s3360_s9, %s2635_s16  ;;  %s87_s20 = int_to_ptr.vmem [resolvable:$true] %s86_s20 }
  0x46   :  { %p2639_p5 = scmp.lt.u32.totalorder %s2635_s16, %s3360_s9 }
  0x48   :  { %p2641_p6 = pnand %p2639_p5, %p2636_p4 }
  0x4a   :  { %2644 = shalt.err (!%p2641_p6)
}
  0x4b   :  { %s2645_s27 = scalar_lea.vmem %s87_s20, 2048  ;;  %p2650_p8 = scmp.lt.s32.totalorder %s87_s20, %s87_s20 }
  0x4c   :  { %p2646_p7 = scmp.ne.s32.totalorder %s87_s20, %s2645_s27  ;;  %p2651_p9 = scmp.lt.s32.totalorder %s2645_s27, %s2645_s27 }
  0x4e   :  { %p2652_p10 = por %p2651_p9, %p2650_p8 }
  0x50   :  { %p2653_p11 = pnand %p2652_p10, %p2646_p7 }
  0x52   :  { %2656 = shalt.err (!%p2653_p11)
}
  0x53   :  { %92 = dma.hbm_to_vmem [thread:$0]  %s3360_s9, 2048, %s87_s20, [#allocation9], %s2689_s25, %s2689_s25, %s2690_s26  }
  0x54   :  { %2679 = dma.done.wait [#allocation3], 512  }
  0x55   :  { %2680 = vsyncadd [#allocation3], 4294966784 }
  0x56   :  { %2681 = dma.done.wait [#allocation6], 3584  }
  0x57   :  { %2682 = vsyncadd [#allocation6], 4294963712 }
  0x58   :  { %2683 = dma.done.wait [#allocation9], 2560  }
  0x59   :  { %2684 = vsyncadd [#allocation9], 4294964736  ;;  %vm144_vm0 = vcmask 261120   ;;  %v140_v0 = vld [vmem:[#allocation2] sm:$0xff]  ;;  %v141_v1 = vld [vmem:[#allocation2 + $0x8] sm:$0xff]  ;;  %s2694_s29 = smov 64  }
  0x5a   :  { %v142_v2 = vld [vmem:[#allocation2 + $0x10] sm:$0xff]  ;;  %v2223_v3 = vpack.c.bf16 %v141_v1, %v140_v0  ;;  %v143_v4 = vld [vmem:[#allocation2 + $0x18] sm:$0xff]  ;;  %v2863_v5 = vld [vmem:[#allocation7] sm:$0xff]  ;;  %343 = vrot.lane.b32.xlu0 %v140_v0, %s2694_s29  ;;  %v2695_v14 = vmov 0.0|0.0   ;;  %vm355_vm1 = vcmask 523264   ;;  %vm2696_vm2 = vmmov 0  }
  0x5b   :  { %v2865_v6 = vld [vmem:[#allocation8] sm:$0xff]  ;;  %347 = vrot.lane.b32.xlu1 %v142_v2, %s2694_s29  ;;  %v2227_v7 = vpack.c.bf16 %v143_v4, %v142_v2  ;;  %1905 = vmatprep.mubr.msk.f32.mxu0 %vm144_vm0, %v2863_v5  ;;  %v361_v9 = vld [vmem:[#allocation5 + $0x8] sm:$0xff]  ;;  %v2875_v12 = vld [vmem:[#allocation7 + $0x10] sm:$0xff] }
  0x5c   :  { %1919 = vmatprep.mubr.msk.f32.mxu1 %vm144_vm0, %v2865_v6  ;;  %2224 = vmatprep.subr.bf16.mxu0 %v2223_v3  ;;  %v360_v8 = vld [vmem:[#allocation5] sm:$0xff]  ;;  %v2871_v10 = vld [vmem:[#allocation7 + $0x8] sm:$0xff]  ;;  %v2877_v13 = vld [vmem:[#allocation8 + $0x10] sm:$0xff] }
  0x5d   :  { %2232 = vmatprep.subr.bf16.mxu1 %v2223_v3  ;;  %2226 = vmatpush3.bf16.msra.mxu0 %v2223_v3  ;;  %v2873_v11 = vld [vmem:[#allocation8 + $0x8] sm:$0xff]  ;;  %v2240_v15 = vpack.c.bf16 %v361_v9, %v360_v8  ;;  %v362_v16 = vld [vmem:[#allocation5 + $0x10] sm:$0xff]  ;;  %v363_v17 = vld [vmem:[#allocation5 + $0x18] sm:$0xff] }
  0x5e   :  { %2234 = vmatpush3.bf16.msra.mxu1 %v2223_v3  ;;  %2228 = vmatprep.subr.bf16.mxu0 %v2227_v7  ;;  %v2889_v18 = vld [vmem:[#allocation7 + $0x18] sm:$0xff]  ;;  %v2243_v20 = vpack.c.bf16 %v363_v17, %v362_v16  ;;  %v364_v21 = vld [vmem:[#allocation5 + $0x20] sm:$0xff]  ;;  %v365_v22 = vld [vmem:[#allocation5 + $0x28] sm:$0xff] }
  0x5f   :  { %2236 = vmatprep.subr.bf16.mxu1 %v2227_v7  ;;  %345 = vrot.lane.b32.xlu0 %v141_v1, %s2694_s29  ;;  %v2891_v19 = vld [vmem:[#allocation8 + $0x18] sm:$0xff]  ;;  %v2246_v23 = vpack.c.bf16 %v365_v22, %v364_v21  ;;  %v366_v24 = vld [vmem:[#allocation5 + $0x30] sm:$0xff]  ;;  %v368_v27 = vld [vmem:[#allocation5 + $0x40] sm:$0xff] }
  0x60   :  { %349 = vrot.lane.b32.xlu1 %v143_v4, %s2694_s29  ;;  %v367_v25 = vld [vmem:[#allocation5 + $0x38] sm:$0xff]  ;;  %v369_v28 = vld [vmem:[#allocation5 + $0x48] sm:$0xff]  ;;  %v370_v30 = vld [vmem:[#allocation5 + $0x50] sm:$0xff] }
  0x61   :  { %2230 = vmatpush3.bf16.msra.mxu0 %v2227_v7  ;;  %v2249_v26 = vpack.c.bf16 %v367_v25, %v366_v24  ;;  %v2252_v29 = vpack.c.bf16 %v369_v28, %v368_v27  ;;  %v371_v31 = vld [vmem:[#allocation5 + $0x58] sm:$0xff]  ;;  %v372_v33 = vld [vmem:[#allocation5 + $0x60] sm:$0xff]  ;;  %v373_v34 = vld [vmem:[#allocation5 + $0x68] sm:$0xff] }
  0x62   :  { %2238 = vmatpush3.bf16.msra.mxu1 %v2227_v7  ;;  %2239 = vmatprep.subr.bf16.mxu0 %v2695_v14  ;;  %v2255_v32 = vpack.c.bf16 %v371_v31, %v370_v30  ;;  %v2258_v35 = vpack.c.bf16 %v373_v34, %v372_v33  ;;  %v374_v36 = vld [vmem:[#allocation5 + $0x70] sm:$0xff]  ;;  %v375_v37 = vld [vmem:[#allocation5 + $0x78] sm:$0xff]  ;;  %v376_v39 = vld [vmem:[#allocation5 + $0x80] sm:$0xff] }
  0x63   :  { %2275 = vmatprep.subr.bf16.mxu1 %v2695_v14  ;;  %v2261_v38 = vpack.c.bf16 %v375_v37, %v374_v36  ;;  %v377_v40 = vld [vmem:[#allocation5 + $0x88] sm:$0xff]  ;;  %v378_v42 = vld [vmem:[#allocation5 + $0x90] sm:$0xff]  ;;  %v379_v43 = vld [vmem:[#allocation5 + $0x98] sm:$0xff] }
  0x64   :  { %1906 = vmatmul.mubr.msk.f32.vlgmr.msra.gmra.mrb[0].mxu0 %vm144_vm0, %v2871_v10  ;;  %v2264_v41 = vpack.c.bf16 %v377_v40, %v376_v39  ;;  %v2267_v44 = vpack.c.bf16 %v379_v43, %v378_v42  ;;  %v380_v45 = vld [vmem:[#allocation5 + $0xa0] sm:$0xff]  ;;  %v381_v46 = vld [vmem:[#allocation5 + $0xa8] sm:$0xff]  ;;  %v382_v48 = vld [vmem:[#allocation5 + $0xb0] sm:$0xff] }
  0x65   :  { %1920 = vmatmul.mubr.msk.f32.vlgmr.msra.gmra.mrb[0].mxu1 %vm144_vm0, %v2873_v11  ;;  %1908 = vmatprep.mubr.msk.f32.mxu0 %vm144_vm0, %v2875_v12  ;;  %v2270_v47 = vpack.c.bf16 %v381_v46, %v380_v45  ;;  %v383_v49 = vld [vmem:[#allocation5 + $0xb8] sm:$0xff]  ;;  %v124_v51 = vld [vmem:[#allocation10] sm:$0xff]  ;;  %v125_v52 = vld [vmem:[#allocation10 + $0x8] sm:$0xff] }
  0x66   :  { %1922 = vmatprep.mubr.msk.f32.mxu1 %vm144_vm0, %v2877_v13  ;;  %2241 = vmatpush1.bf16.msra.mxu0 %v2240_v15  ;;  %v2273_v50 = vpack.c.bf16 %v383_v49, %v382_v48  ;;  %v2908_v53 = vpack.c.bf16 %v125_v52, %v124_v51  ;;  %v126_v8 = vld [vmem:[#allocation10 + $0x10] sm:$0xff]  ;;  %v127_v9 = vld [vmem:[#allocation10 + $0x18] sm:$0xff]  ;;  %v128_v16 = vld [vmem:[#allocation10 + $0x20] sm:$0xff] }
  0x67   :  { %2242 = vmatprep.subr.bf16.mxu0 %v2695_v14  ;;  %v2922_v15 = vpack.c.bf16 %v127_v9, %v126_v8  ;;  %v129_v17 = vld [vmem:[#allocation10 + $0x28] sm:$0xff]  ;;  %v130_v21 = vld [vmem:[#allocation10 + $0x30] sm:$0xff]  ;;  %v131_v22 = vld [vmem:[#allocation10 + $0x38] sm:$0xff] }
  0x68   :  { %1909 = vmatmul.mubr.msk.f32.gmra.mrb[2].mxu0 %vm144_vm0, %v2889_v18  ;;  %2277 = vmatpush3.bf16.msra.mxu1 %v2908_v53  ;;  %v133_v24 = vld [vmem:[#allocation10 + $0x48] sm:$0xff]  ;;  %v135_v27 = vld [vmem:[#allocation10 + $0x58] sm:$0xff] }
  0x69   :  { %1923 = vmatmul.mubr.msk.f32.gmra.mrb[2].mxu1 %vm144_vm0, %v2891_v19  ;;  %2278 = vmatprep.subr.bf16.mxu1 %v2695_v14  ;;  %v137_v30 = vld [vmem:[#allocation10 + $0x68] sm:$0xff]  ;;  %v139_v33 = vld [vmem:[#allocation10 + $0x78] sm:$0xff] }
  0x6a   :  { %2244 = vmatpush1.bf16.msra.mxu0 %v2243_v20  ;;  %v2926_v20 = vpack.c.bf16 %v129_v17, %v128_v16 }
  0x6b   :  { %2245 = vmatprep.subr.bf16.mxu0 %v2695_v14 }
  0x6c   :  { %2280 = vmatpush3.bf16.msra.mxu1 %v2922_v15 }
  0x6d   :  { %2281 = vmatprep.subr.bf16.mxu1 %v2695_v14 }
  0x6e   :  { %2247 = vmatpush1.bf16.msra.mxu0 %v2246_v23  ;;  %v2930_v23 = vpack.c.bf16 %v131_v22, %v130_v21 }
  0x6f   :  { %2248 = vmatprep.subr.bf16.mxu0 %v2695_v14 }
  0x70   :  { %2283 = vmatpush3.bf16.msra.mxu1 %v2926_v20 }
  0x71   :  { %2284 = vmatprep.subr.bf16.mxu1 %v2695_v14 }
  0x72   :  { %2250 = vmatpush1.bf16.msra.mxu0 %v2249_v26  ;;  %v134_v26 = vld [vmem:[#allocation10 + $0x50] sm:$0xff] }
  0x73   :  { %2251 = vmatprep.subr.bf16.mxu0 %v2695_v14  ;;  %v2938_v28 = vpack.c.bf16 %v135_v27, %v134_v26  ;;  %v875_v27 = vld [vmem:[%s3355_s4 + $0x80] sm:$0xff] }
  0x74   :  { %2286 = vmatpush3.bf16.msra.mxu1 %v2930_v23 }
  0x75   :  { %2287 = vmatprep.subr.bf16.mxu1 %v2695_v14 }
  0x76   :  { %2253 = vmatpush1.bf16.msra.mxu0 %v2252_v29  ;;  %v136_v29 = vld [vmem:[#allocation10 + $0x60] sm:$0xff] }
  0x77   :  { %2254 = vmatprep.subr.bf16.mxu0 %v2695_v14  ;;  %v2942_v31 = vpack.c.bf16 %v137_v30, %v136_v29  ;;  %v876_v29 = vld [vmem:[%s3355_s4 + $0x88] sm:$0xff]  ;;  %v859_v30 = vld [vmem:[%s3355_s4] sm:$0xff] }
  0x7a   :  { %2256 = vmatpush1.bf16.msra.mxu0 %v2255_v32  ;;  %v138_v32 = vld [vmem:[#allocation10 + $0x70] sm:$0xff] }
  0x7b   :  { %2257 = vmatprep.subr.bf16.mxu0 %v2695_v14  ;;  %v2946_v34 = vpack.c.bf16 %v139_v33, %v138_v32  ;;  %v2339_v32 = vpack.c.bf16 %v876_v29, %v875_v27  ;;  %v860_v33 = vld [vmem:[%s3355_s4 + $0x8] sm:$0xff]  ;;  %v890_v27 = vld [vmem:[%s3355_s4 + $0xf8] sm:$0xff] }
  0x7e   :  { %2259 = vmatpush1.bf16.msra.mxu0 %v2258_v35  ;;  %v2697_v35 = vmov 0.0  }
  0x7f   :  { %2260 = vmatprep.subr.bf16.mxu0 %v2695_v14  ;;  %1957 = vmatprep.mubr.msk.f32.mxu1 %vm2696_vm2, %v2697_v35 }
  0x82   :  { %2262 = vmatpush1.bf16.msra.mxu0 %v2261_v38 }
  0x83   :  { %2263 = vmatprep.subr.bf16.mxu0 %v2695_v14 }
  0x86   :  { %2265 = vmatpush1.bf16.msra.mxu0 %v2264_v41 }
  0x87   :  { %2266 = vmatprep.subr.bf16.mxu0 %v2695_v14 }
  0x8a   :  { %2268 = vmatpush1.bf16.msra.mxu0 %v2267_v44 }
  0x8b   :  { %2269 = vmatprep.subr.bf16.mxu0 %v2695_v14 }
  0x8e   :  { %2271 = vmatpush1.bf16.msra.mxu0 %v2270_v47 }
  0x8f   :  { %2272 = vmatprep.subr.bf16.mxu0 %v2695_v14 }
  0x92   :  { %2274 = vmatpush1.bf16.msra.mxu0 %v2273_v50 }
  0xcc   :  { %v344_v54 = vpop.permute.xlu0 %343 }
  0xcd   :  { %v348_v61 = vpop.permute.xlu1 %347 }
  0xd1   :  { %v346_v60 = vpop.permute.xlu0 %345 }
  0xd2   :  { %v350_v4 = vpop.permute.xlu1 %349 }
 0x137   :  { %v1907_v55 = vpop.f32.mrb[0].mxu0 }
 0x138   :  { %v1921_v56 = vpop.f32.mrb[0].mxu1  ;;  %v223_v57 = vpop.f32.mrb[1].mxu0  ;;  %v357_v2 = vsel %vm355_vm1, %v1907_v55, %v346_v60  ;;  %v562_v55 = vlaneseq }
 0x139   :  { %v320_v58 = vpop.f32.mrb[1].mxu1  ;;  %v356_v59 = vsel %vm355_vm1, %v223_v57, %v344_v54 }
 0x13a   :  { %1665 = vmatprep.mubr.msk.f32.mxu0 %vm355_vm1, %v320_v58 }
 0x13b   :  { %461 = vmatmul.mubr.f32.vlgmr.msra.gmra.mrb[4].mxu0 %v356_v59  ;;  %v1910_v62 = vpop.f32.mrb[2].mxu0 }
 0x13c   :  { %1666 = vmatprep.mubr.msk.f32.mxu0 %vm355_vm1, %v1921_v56  ;;  %v1924_v63 = vpop.f32.mrb[2].mxu1  ;;  %v233_v0 = vpop.f32.mrb[3].mxu0  ;;  %v359_v7 = vsel %vm355_vm1, %v1910_v62, %v350_v4  ;;  %v563_v56 = vshrl.u32 %v562_v55, 7  ;;  %v883_v55 = vld [vmem:[%s3355_s4 + $0xc0] sm:$0xff] }
 0x13d   :  { %v330_v1 = vpop.f32.mrb[3].mxu1  ;;  %v358_v3 = vsel %vm355_vm1, %v233_v0, %v348_v61 }
 0x13e   :  { %v2969_v57 = vsub.s32 0, %v563_v56  ;;  %v884_v56 = vld [vmem:[%s3355_s4 + $0xc8] sm:$0xff] }
 0x13f   :  { %466 = vmatmul.mubr.f32.gmra.mrb[6].mxu0 %v357_v2 }
 0x140   :  { %1667 = vmatprep.mubr.msk.f32.mxu0 %vm355_vm1, %v330_v1 }
 0x143   :  { %471 = vmatmul.mubr.f32.gmra.mrb[8].mxu0 %v358_v3 }
 0x144   :  { %1668 = vmatprep.mubr.msk.f32.mxu0 %vm355_vm1, %v1924_v63 }
 0x147   :  { %476 = vmatmul.mubr.f32.gmra.mrb[10].mxu0 %v359_v7 }
 0x148   :  { %2003 = vmatprep.mubr.msk.f32.mxu0 %vm144_vm0, %v2863_v5  ;;  %v132_v5 = vld [vmem:[#allocation10 + $0x40] sm:$0xff] }
 0x149   :  { %v2934_v25 = vpack.c.bf16 %v133_v24, %v132_v5 }
 0x14b   :  { %2289 = vmatpush3.bf16.msra.mxu1 %v2934_v25 }
 0x14c   :  { %2290 = vmatprep.subr.bf16.mxu1 %v2695_v14 }
 0x14f   :  { %2292 = vmatpush3.bf16.msra.mxu1 %v2938_v28 }
 0x150   :  { %2293 = vmatprep.subr.bf16.mxu1 %v2695_v14 }
 0x153   :  { %2295 = vmatpush3.bf16.msra.mxu1 %v2942_v31 }
 0x154   :  { %2296 = vmatprep.subr.bf16.mxu1 %v2695_v14 }
 0x157   :  { %2298 = vmatpush3.bf16.msra.mxu1 %v2946_v34 }
 0x158   :  { %2299 = vmatprep.subr.bf16.mxu1 %v2695_v14 }
 0x20e   :  { %v462_v36 = vpop.f32.mrb[4].mxu0 }
 0x20f   :  { %v464_v37 = vpop.f32.mrb[5].mxu0 }
 0x210   :  { %v878_v37 = vld [vmem:[%s3355_s4 + $0x98] sm:$0xff] }
 0x212   :  { %v467_v38 = vpop.f32.mrb[6].mxu0 }
 0x213   :  { %v481_v39 = vadd.f32 %v467_v38, %v462_v36  ;;  %v469_v40 = vpop.f32.mrb[7].mxu0 }
 0x214   :  { %v861_v40 = vld [vmem:[%s3355_s4 + $0x10] sm:$0xff] }
 0x216   :  { %v472_v41 = vpop.f32.mrb[8].mxu0 }
 0x217   :  { %v482_v42 = vadd.f32 %v481_v39, %v472_v41  ;;  %v474_v43 = vpop.f32.mrb[9].mxu0 }
 0x218   :  { %v880_v43 = vld [vmem:[%s3355_s4 + $0xa8] sm:$0xff] }
 0x21a   :  { %v477_v44 = vpop.f32.mrb[10].mxu0 }
 0x21b   :  { %v483_v45 = vadd.f32 %v482_v42, %v477_v44  ;;  %v479_v46 = vpop.f32.mrb[11].mxu0  ;;  %v879_v42 = vld [vmem:[%s3355_s4 + $0xa0] sm:$0xff] }
 0x21c   :  { %v863_v46 = vld [vmem:[%s3355_s4 + $0x20] sm:$0xff] }
 0x21d   :  { %v484_v47 = vrot.slane %v483_v45, 4 }
 0x21f   :  { %v485_v48 = vadd.f32 %v484_v47, %v483_v45  ;;  %v2347_v45 = vpack.c.bf16 %v880_v43, %v879_v42  ;;  %v864_v47 = vld [vmem:[%s3355_s4 + $0x28] sm:$0xff]  ;;  %v1669_v42 = vld [vmem:[%s3353_s2] ss:$0 sm:$0xff] }
 0x221   :  { %v486_v49 = vrot.slane %v485_v48, 2 }
 0x223   :  { %v487_v50 = vadd.f32 %v486_v49, %v485_v48  ;;  %v881_v48 = vld [vmem:[%s3355_s4 + $0xb0] sm:$0xff]  ;;  %v882_v49 = vld [vmem:[%s3355_s4 + $0xb8] sm:$0xff] }
 0x225   :  { %v488_v51 = vrot.slane %v487_v50, 1 }
 0x227   :  { %v489_v52 = vadd.f32 %v488_v51, %v487_v50  ;;  %v2349_v50 = vpack.c.bf16 %v864_v47, %v863_v46  ;;  %v2351_v51 = vpack.c.bf16 %v882_v49, %v881_v48  ;;  %v1670_v47 = vld [vmem:[%s3354_s3] ss:$0 sm:$0xff] }
 0x229   :  { %v491_v54 = vmul.f32 0.03125, %v489_v52  ;;  %v865_v52 = vld [vmem:[%s3355_s4 + $0x30] sm:$0xff] }
 0x22b   :  { %1958 = vmatmul.mubr.f32.vlgmr.msra.gmra.mrb[4].mxu1 %v491_v54  ;;  %v866_v54 = vld [vmem:[%s3355_s4 + $0x38] sm:$0xff] }
 0x22c   :  { %2301 = vmatpush3.bf16.msra.mxu1 %v2908_v53  ;;  %1992 = vmatprep.mubr.msk.f32.mxu1 %vm2696_vm2, %v2697_v35 }
 0x22d   :  { %2302 = vmatprep.subr.bf16.mxu1 %v2695_v14 }
 0x230   :  { %2304 = vmatpush3.bf16.msra.mxu1 %v2922_v15 }
 0x231   :  { %2305 = vmatprep.subr.bf16.mxu1 %v2695_v14 }
 0x234   :  { %2307 = vmatpush3.bf16.msra.mxu1 %v2926_v20 }
 0x235   :  { %2308 = vmatprep.subr.bf16.mxu1 %v2695_v14 }
 0x238   :  { %2310 = vmatpush3.bf16.msra.mxu1 %v2930_v23 }
 0x239   :  { %2311 = vmatprep.subr.bf16.mxu1 %v2695_v14 }
 0x23c   :  { %2313 = vmatpush3.bf16.msra.mxu1 %v2934_v25 }
 0x23d   :  { %2314 = vmatprep.subr.bf16.mxu1 %v2695_v14 }
 0x240   :  { %2316 = vmatpush3.bf16.msra.mxu1 %v2938_v28 }
 0x241   :  { %2317 = vmatprep.subr.bf16.mxu1 %v2695_v14 }
 0x244   :  { %2319 = vmatpush3.bf16.msra.mxu1 %v2942_v31 }
 0x245   :  { %2320 = vmatprep.subr.bf16.mxu1 %v2695_v14 }
 0x248   :  { %2322 = vmatpush3.bf16.msra.mxu1 %v2946_v34 }
 0x249   :  { %2340 = vmatprep.subr.bf16.mxu1 %v2339_v32  ;;  %v873_v32 = vld [vmem:[%s3355_s4 + $0x70] sm:$0xff] }
 0x2fe   :  { %v558_v58 = vpop.f32.mrb[4].mxu1 }
 0x2ff   :  { %v565_v59 = vrot.slane %v558_v58, %v2969_v57  ;;  %v1959_v60 = vpop.f32.mrb[5].mxu1  ;;  %v2353_v58 = vpack.c.bf16 %v866_v54, %v865_v52 }
 0x300   :  { %v867_v60 = vld [vmem:[%s3355_s4 + $0x40] sm:$0xff] }
 0x301   :  { %v2972_v61 = vsub.f32 %v462_v36, %v565_v59  ;;  %v2974_v62 = vsub.f32 %v467_v38, %v565_v59  ;;  %v2976_v63 = vsub.f32 %v472_v41, %v565_v59  ;;  %v2978_v0 = vsub.f32 %v477_v44, %v565_v59  ;;  %v877_v36 = vld [vmem:[%s3355_s4 + $0x90] sm:$0xff]  ;;  %v862_v41 = vld [vmem:[%s3355_s4 + $0x18] sm:$0xff] }
 0x302   :  { %v2341_v38 = vpack.c.bf16 %v860_v33, %v859_v30  ;;  %v2343_v39 = vpack.c.bf16 %v878_v37, %v877_v36  ;;  %v2345_v44 = vpack.c.bf16 %v862_v41, %v861_v40  ;;  %v2355_v59 = vpack.c.bf16 %v884_v56, %v883_v55  ;;  %v874_v33 = vld [vmem:[%s3355_s4 + $0x78] sm:$0xff] }
 0x303   :  { %v570_v1 = vmul.f32 %v2972_v61, %v2972_v61  ;;  %v571_v2 = vmul.f32 %v2974_v62, %v2974_v62  ;;  %v572_v3 = vmul.f32 %v2976_v63, %v2976_v63  ;;  %v573_v7 = vmul.f32 %v2978_v0, %v2978_v0 }
 0x304   :  { %v2369_v36 = vpack.c.bf16 %v874_v33, %v873_v32 }
 0x305   :  { %v574_v4 = vadd.f32 %v571_v2, %v570_v1  ;;  %v868_v1 = vld [vmem:[%s3355_s4 + $0x48] sm:$0xff]  ;;  %v885_v2 = vld [vmem:[%s3355_s4 + $0xd0] sm:$0xff] }
 0x307   :  { %v575_v8 = vadd.f32 %v574_v4, %v572_v3  ;;  %v886_v3 = vld [vmem:[%s3355_s4 + $0xd8] sm:$0xff]  ;;  %v2357_v4 = vpack.c.bf16 %v868_v1, %v867_v60  ;;  %v891_v60 = vld [vmem:[%s3355_s4 + $0x100] sm:$0xff]  ;;  %v892_v1 = vld [vmem:[%s3355_s4 + $0x108] sm:$0xff] }
 0x309   :  { %v576_v9 = vadd.f32 %v575_v8, %v573_v7  ;;  %v2359_v7 = vpack.c.bf16 %v886_v3, %v885_v2  ;;  %v869_v8 = vld [vmem:[%s3355_s4 + $0x50] sm:$0xff]  ;;  %v2371_v2 = vpack.c.bf16 %v892_v1, %v891_v60 }
 0x30a   :  { %v893_v3 = vld [vmem:[%s3355_s4 + $0x110] sm:$0xff] }
 0x30b   :  { %v577_v16 = vrot.slane %v576_v9, 4 }
 0x30d   :  { %v578_v17 = vadd.f32 %v577_v16, %v576_v9  ;;  %v870_v9 = vld [vmem:[%s3355_s4 + $0x58] sm:$0xff]  ;;  %v887_v16 = vld [vmem:[%s3355_s4 + $0xe0] sm:$0xff] }
 0x30f   :  { %v579_v21 = vrot.slane %v578_v17, 2 }
 0x311   :  { %v580_v22 = vadd.f32 %v579_v21, %v578_v17  ;;  %v888_v17 = vld [vmem:[%s3355_s4 + $0xe8] sm:$0xff]  ;;  %v2361_v21 = vpack.c.bf16 %v870_v9, %v869_v8  ;;  %v898_v8 = vld [vmem:[%s3355_s4 + $0x138] sm:$0xff] }
 0x312   :  { %v900_v9 = vld [vmem:[%s3355_s4 + $0x148] sm:$0xff] }
 0x313   :  { %v581_v5 = vrot.slane %v580_v22, 1 }
 0x315   :  { %v582_v24 = vadd.f32 %v581_v5, %v580_v22  ;;  %v2363_v22 = vpack.c.bf16 %v888_v17, %v887_v16  ;;  %v871_v5 = vld [vmem:[%s3355_s4 + $0x60] sm:$0xff]  ;;  %v901_v17 = vld [vmem:[%s3355_s4 + $0x150] sm:$0xff] }
 0x317   :  { %v583_v26 = vmul.f32 0.03125, %v582_v24  ;;  %v872_v24 = vld [vmem:[%s3355_s4 + $0x68] sm:$0xff] }
 0x318   :  { %v2365_v29 = vpack.c.bf16 %v872_v24, %v871_v5  ;;  %v904_v5 = vld [vmem:[%s3355_s4 + $0x168] sm:$0xff] }
 0x319   :  { %1993 = vmatmul.mubr.f32.vlgmr.msra.gmra.mrb[6].mxu1 %v583_v26  ;;  %v889_v26 = vld [vmem:[%s3355_s4 + $0xf0] sm:$0xff] }
 0x31a   :  { %2342 = vmatpush3.bf16.msra.mxu1 %v2341_v38  ;;  %v2367_v30 = vpack.c.bf16 %v890_v27, %v889_v26  ;;  %v905_v26 = vld [vmem:[%s3355_s4 + $0x170] sm:$0xff]  ;;  %v906_v27 = vld [vmem:[%s3355_s4 + $0x178] sm:$0xff] }
 0x31b   :  { %2344 = vmatprep.subr.bf16.mxu1 %v2343_v39 }
 0x31e   :  { %2346 = vmatpush3.bf16.msra.mxu1 %v2345_v44 }
 0x31f   :  { %2348 = vmatprep.subr.bf16.mxu1 %v2347_v45 }
 0x322   :  { %2350 = vmatpush3.bf16.msra.mxu1 %v2349_v50 }
 0x323   :  { %2352 = vmatprep.subr.bf16.mxu1 %v2351_v51 }
 0x326   :  { %2354 = vmatpush3.bf16.msra.mxu1 %v2353_v58 }
 0x327   :  { %2356 = vmatprep.subr.bf16.mxu1 %v2355_v59 }
 0x32a   :  { %2358 = vmatpush3.bf16.msra.mxu1 %v2357_v4  ;;  %v894_v4 = vld [vmem:[%s3355_s4 + $0x118] sm:$0xff] }
 0x32b   :  { %2360 = vmatprep.subr.bf16.mxu1 %v2359_v7  ;;  %v896_v7 = vld [vmem:[%s3355_s4 + $0x128] sm:$0xff] }
 0x32e   :  { %2362 = vmatpush3.bf16.msra.mxu1 %v2361_v21 }
 0x32f   :  { %2364 = vmatprep.subr.bf16.mxu1 %v2363_v22  ;;  %v903_v22 = vld [vmem:[%s3355_s4 + $0x160] sm:$0xff] }
 0x330   :  { %v2395_v24 = vpack.c.bf16 %v904_v5, %v903_v22 }
 0x332   :  { %2366 = vmatpush3.bf16.msra.mxu1 %v2365_v29  ;;  %v2399_v29 = vpack.c.bf16 %v906_v27, %v905_v26  ;;  %v1367_v26 = vld [vmem:[%s3362_s11] sm:$0xff] }
 0x333   :  { %2368 = vmatprep.subr.bf16.mxu1 %v2367_v30 }
 0x336   :  { %2370 = vmatpush3.bf16.msra.mxu1 %v2369_v36 }
 0x337   :  { %2403 = vmatprep.subr.bf16.mxu1 %v2695_v14 }
 0x3ec   :  { %v650_v37 = vpop.f32.mrb[6].mxu1 }
 0x3ed   :  { %v651_v38 = vadd.f32 1e-05, %v650_v37  ;;  %v1994_v39 = vpop.f32.mrb[7].mxu1 }
 0x3ef   :  { %2543 = vrsqrt.f32 %v651_v38 }
 0x3f9   :  { %v2544_v40 = vpop.eup %2543 }
 0x3fa   :  { %v658_v41 = vrot.slane %v2544_v40, %v2969_v57 }
 0x3fc   :  { %v659_v43 = vmul.f32 %v658_v41, %v2972_v61  ;;  %v660_v44 = vmul.f32 %v658_v41, %v2974_v62  ;;  %v661_v45 = vmul.f32 %v658_v41, %v2976_v63  ;;  %v662_v46 = vmul.f32 %v658_v41, %v2978_v0 }
 0x3fe   :  { %v670_v48 = vmul.f32 %v1669_v42, %v659_v43  ;;  %v671_v49 = vmul.f32 %v1669_v42, %v660_v44  ;;  %v672_v50 = vmul.f32 %v1669_v42, %v661_v45  ;;  %v673_v51 = vmul.f32 %v1669_v42, %v662_v46 }
 0x400   :  { %v681_v52 = vadd.f32 %v1670_v47, %v670_v48  ;;  %v3096_v54 = vadd.f32 %v1670_v47, %v671_v49  ;;  %v3098_v55 = vadd.f32 %v1670_v47, %v672_v50  ;;  %v3100_v61 = vadd.f32 %v1670_v47, %v673_v51 }
 0x402   :  { %v685_v62 = vmax.f32 %v681_v52, 0.0  ;;  %v686_v63 = vmax.f32 %v3096_v54, 0.0  ;;  %v687_v0 = vmax.f32 %v3098_v55, 0.0  ;;  %v688_v56 = vmax.f32 %v3100_v61, 0.0 }
 0x404   :  { %v2323_v58 = vpack.c.bf16 %v686_v63, %v685_v62  ;;  %971 = vmatprep.mubr.f32.mxu1 %v685_v62  ;;  %v2327_v59 = vpack.c.bf16 %v688_v56, %v687_v0 }
 0x406   :  { %2324 = vmatprep.subr.bf16.mxu0 %v2323_v58 }
 0x407   :  { %2326 = vmatpush3.bf16.msra.mxu0 %v2323_v58 }
 0x408   :  { %2328 = vmatprep.subr.bf16.mxu0 %v2327_v59 }
 0x40b   :  { %2330 = vmatpush3.bf16.msra.mxu0 %v2327_v59 }
 0x40c   :  { %2332 = vmatprep.subr.bf16.mxu0 %v2323_v58 }
 0x40e   :  { %2004 = vmatmul.mubr.msk.f32.vlgmr.msra.gmra.mrb[12].mxu0 %vm144_vm0, %v2871_v10  ;;  %v2375_v10 = vpack.c.bf16 %v894_v4, %v893_v3 }
 0x40f   :  { %2334 = vmatpush3.bf16.msra.mxu0 %v2323_v58  ;;  %2006 = vmatprep.mubr.msk.f32.mxu0 %vm144_vm0, %v2875_v12  ;;  %v895_v12 = vld [vmem:[%s3355_s4 + $0x120] sm:$0xff] }
 0x410   :  { %2336 = vmatprep.subr.bf16.mxu0 %v2327_v59 }
 0x412   :  { %2007 = vmatmul.mubr.msk.f32.gmra.mrb[14].mxu0 %vm144_vm0, %v2889_v18  ;;  %v2379_v18 = vpack.c.bf16 %v896_v7, %v895_v12 }
 0x413   :  { %2338 = vmatpush3.bf16.msra.mxu0 %v2327_v59  ;;  %2017 = vmatprep.mubr.msk.f32.mxu0 %vm144_vm0, %v2865_v6  ;;  %v897_v6 = vld [vmem:[%s3355_s4 + $0x130] sm:$0xff] }
 0x414   :  { %2372 = vmatprep.subr.bf16.mxu0 %v2371_v2 }
 0x416   :  { %2018 = vmatmul.mubr.msk.f32.vlgmr.msra.gmra.mrb[16].mxu0 %vm144_vm0, %v2873_v11  ;;  %v2383_v11 = vpack.c.bf16 %v898_v8, %v897_v6 }
 0x417   :  { %2020 = vmatprep.mubr.msk.f32.mxu0 %vm144_vm0, %v2877_v13  ;;  %2374 = vmatpush3.bf16.msra.mxu0 %v2371_v2  ;;  %v899_v13 = vld [vmem:[%s3355_s4 + $0x140] sm:$0xff] }
 0x418   :  { %2376 = vmatprep.subr.bf16.mxu0 %v2375_v10  ;;  %v2387_v16 = vpack.c.bf16 %v900_v9, %v899_v13 }
 0x41a   :  { %2021 = vmatmul.mubr.msk.f32.gmra.mrb[18].mxu0 %vm144_vm0, %v2891_v19  ;;  %v902_v19 = vld [vmem:[%s3355_s4 + $0x158] sm:$0xff] }
 0x41b   :  { %2378 = vmatpush3.bf16.msra.mxu0 %v2375_v10  ;;  %v2391_v21 = vpack.c.bf16 %v902_v19, %v901_v17 }
 0x41c   :  { %2380 = vmatprep.subr.bf16.mxu0 %v2379_v18 }
 0x41f   :  { %2382 = vmatpush3.bf16.msra.mxu0 %v2379_v18 }
 0x420   :  { %2384 = vmatprep.subr.bf16.mxu0 %v2383_v11 }
 0x423   :  { %2386 = vmatpush3.bf16.msra.mxu0 %v2383_v11 }
 0x424   :  { %2388 = vmatprep.subr.bf16.mxu0 %v2387_v16 }
 0x427   :  { %2390 = vmatpush3.bf16.msra.mxu0 %v2387_v16 }
 0x428   :  { %2392 = vmatprep.subr.bf16.mxu0 %v2391_v21 }
 0x42b   :  { %2394 = vmatpush3.bf16.msra.mxu0 %v2391_v21 }
 0x42c   :  { %2396 = vmatprep.subr.bf16.mxu0 %v2395_v24 }
 0x42f   :  { %2398 = vmatpush3.bf16.msra.mxu0 %v2395_v24  ;;  %v1284_v24 = vld [vmem:[%s3361_s10] sm:$0xff] }
 0x430   :  { %2400 = vmatprep.subr.bf16.mxu0 %v2399_v29 }
 0x433   :  { %2402 = vmatpush3.bf16.msra.mxu0 %v2399_v29 }
 0x434   :  { %2427 = vmatprep.subr.bf16.mxu0 %v2695_v14 }
 0x4e1   :  { %v2005_v30 = vpop.f32.mrb[12].mxu0 }
 0x4e2   :  { %v755_v32 = vpop.f32.mrb[13].mxu0 }
 0x4e3   :  { %972 = vmatmul.mubr.f32.vlgmr.msra.gmra.mrb[8].mxu1 %v755_v32 }
 0x4e4   :  { %976 = vmatprep.mubr.f32.mxu1 %v686_v63  ;;  %2405 = vmatpush3.bf16.msra.mxu1 %v2908_v53 }
 0x4e5   :  { %v2008_v33 = vpop.f32.mrb[14].mxu0  ;;  %2406 = vmatprep.subr.bf16.mxu1 %v2695_v14 }
 0x4e6   :  { %v765_v36 = vpop.f32.mrb[15].mxu0 }
 0x4e7   :  { %977 = vmatmul.mubr.f32.gmra.mrb[10].mxu1 %v2005_v30 }
 0x4e8   :  { %981 = vmatprep.mubr.f32.mxu1 %v687_v0  ;;  %2408 = vmatpush3.bf16.msra.mxu1 %v2922_v15 }
 0x4e9   :  { %v2019_v37 = vpop.f32.mrb[16].mxu0  ;;  %2409 = vmatprep.subr.bf16.mxu1 %v2695_v14 }
 0x4ea   :  { %v840_v38 = vpop.f32.mrb[17].mxu0 }
 0x4eb   :  { %982 = vmatmul.mubr.f32.gmra.mrb[12].mxu1 %v765_v36  ;;  %2055 = vmatprep.mubr.f32.mxu0 %v840_v38  ;;  %v1679_v36 = vld [vmem:[%s3356_s5] ss:$0 sm:$0xff] }
 0x4ec   :  { %986 = vmatprep.mubr.f32.mxu1 %v688_v56  ;;  %2056 = vmatmul.mubr.f32.vlgmr.msra.gmra.mrb[20].mxu0 %v2019_v37 }
 0x4ed   :  { %v2022_v39 = vpop.f32.mrb[18].mxu0  ;;  %2411 = vmatpush3.bf16.msra.mxu1 %v2926_v20  ;;  %2429 = vmatpush3.bf16.msra.mxu0 %v2908_v53 }
 0x4ee   :  { %v850_v40 = vpop.f32.mrb[19].mxu0  ;;  %2412 = vmatprep.subr.bf16.mxu1 %v2695_v14  ;;  %2430 = vmatprep.subr.bf16.mxu0 %v2695_v14 }
 0x4ef   :  { %987 = vmatmul.mubr.f32.gmra.mrb[14].mxu1 %v2008_v33  ;;  %2058 = vmatprep.mubr.f32.mxu0 %v850_v40 }
 0x4f0   :  { %2059 = vmatmul.mubr.f32.gmra.mrb[22].mxu0 %v2022_v39  ;;  %2093 = vmatprep.mubr.msk.f32.mxu1 %vm2696_vm2, %v2697_v35 }
 0x4f1   :  { %2414 = vmatpush3.bf16.msra.mxu1 %v2930_v23  ;;  %2432 = vmatpush3.bf16.msra.mxu0 %v2922_v15 }
 0x4f2   :  { %2415 = vmatprep.subr.bf16.mxu1 %v2695_v14  ;;  %2433 = vmatprep.subr.bf16.mxu0 %v2695_v14 }
 0x4f3   :  { %2128 = vmatprep.mubr.msk.f32.mxu0 %vm2696_vm2, %v2697_v35 }
 0x4f5   :  { %2417 = vmatpush3.bf16.msra.mxu1 %v2934_v25  ;;  %2435 = vmatpush3.bf16.msra.mxu0 %v2926_v20 }
 0x4f6   :  { %2418 = vmatprep.subr.bf16.mxu1 %v2695_v14  ;;  %2436 = vmatprep.subr.bf16.mxu0 %v2695_v14 }
 0x4f9   :  { %2420 = vmatpush3.bf16.msra.mxu1 %v2938_v28  ;;  %2438 = vmatpush3.bf16.msra.mxu0 %v2930_v23 }
 0x4fa   :  { %2421 = vmatprep.subr.bf16.mxu1 %v2695_v14  ;;  %2439 = vmatprep.subr.bf16.mxu0 %v2695_v14 }
 0x4fd   :  { %2423 = vmatpush3.bf16.msra.mxu1 %v2942_v31  ;;  %2441 = vmatpush3.bf16.msra.mxu0 %v2934_v25 }
 0x4fe   :  { %2424 = vmatprep.subr.bf16.mxu1 %v2695_v14  ;;  %2442 = vmatprep.subr.bf16.mxu0 %v2695_v14 }
 0x501   :  { %2426 = vmatpush3.bf16.msra.mxu1 %v2946_v34  ;;  %2444 = vmatpush3.bf16.msra.mxu0 %v2938_v28 }
 0x502   :  { %2445 = vmatprep.subr.bf16.mxu0 %v2695_v14 }
 0x505   :  { %2447 = vmatpush3.bf16.msra.mxu0 %v2942_v31 }
 0x506   :  { %2448 = vmatprep.subr.bf16.mxu0 %v2695_v14 }
 0x509   :  { %2450 = vmatpush3.bf16.msra.mxu0 %v2946_v34 }
 0x5b6   :  { %v1783_v53 = vpop.f32.mrb[8].mxu1 }
 0x5b7   :  { %v1784_v15 = vpop.f32.mrb[9].mxu1 }
 0x5b8   :  { %v1785_v20 = vadd.f32 %v1784_v15, %v1783_v53  ;;  %v1680_v53 = vld [vmem:[%s3357_s6] ss:$0 sm:$0xff] }
 0x5ba   :  { %v1786_v23 = vpop.f32.mrb[10].mxu1 }
 0x5bb   :  { %v1787_v25 = vpop.f32.mrb[11].mxu1 }
 0x5bc   :  { %v1788_v35 = vadd.f32 %v1787_v25, %v1786_v23 }
 0x5be   :  { %v1789_v41 = vpop.f32.mrb[12].mxu1 }
 0x5bf   :  { %v2057_v42 = vpop.f32.mrb[20].mxu0  ;;  %v1790_v43 = vpop.f32.mrb[13].mxu1 }
 0x5c0   :  { %v1064_v44 = vadd.f32 %v2057_v42, %v1788_v35  ;;  %v1058_v45 = vpop.f32.mrb[21].mxu0  ;;  %v1791_v28 = vadd.f32 %v1790_v43, %v1789_v41 }
 0x5c1   :  { %v1059_v46 = vadd.f32 %v1785_v20, %v1058_v45 }
 0x5c2   :  { %v1792_v47 = vpop.f32.mrb[14].mxu1 }
 0x5c3   :  { %v1793_v48 = vpop.f32.mrb[15].mxu1  ;;  %v2060_v31 = vpop.f32.mrb[22].mxu0  ;;  %v1077_v50 = vadd.f32 %v1064_v44, %v1059_v46 }
 0x5c4   :  { %v1794_v49 = vadd.f32 %v1793_v48, %v1792_v47  ;;  %v1068_v14 = vpop.f32.mrb[23].mxu0  ;;  %v1452_v47 = vld [vmem:[%s3363_s12] sm:$0xff]  ;;  %v1453_v48 = vld [vmem:[%s3363_s12 + $0x8] sm:$0xff] }
 0x5c5   :  { %v1069_v34 = vadd.f32 %v1791_v28, %v1068_v14 }
 0x5c6   :  { %v1074_v51 = vadd.f32 %v2060_v31, %v1794_v49  ;;  %v1543_v31 = vld [vmem:[%s3364_s13] sm:$0xff]  ;;  %v1544_v49 = vld [vmem:[%s3364_s13 + $0x8] sm:$0xff] }
 0x5c7   :  { %v1078_v52 = vadd.f32 %v1077_v50, %v1069_v34  ;;  %v2467_v50 = vpack.c.bf16 %v1453_v48, %v1452_v47 }
 0x5c9   :  { %v1079_v54 = vadd.f32 %v1078_v52, %v1074_v51  ;;  %v1455_v52 = vld [vmem:[%s3363_s12 + $0x18] sm:$0xff] }
 0x5cb   :  { %v1080_v55 = vrot.slane %v1079_v54, 4 }
 0x5cd   :  { %v1081_v61 = vadd.f32 %v1080_v55, %v1079_v54  ;;  %v1545_v54 = vld [vmem:[%s3364_s13 + $0x10] sm:$0xff]  ;;  %v1546_v55 = vld [vmem:[%s3364_s13 + $0x18] sm:$0xff] }
 0x5cf   :  { %v1082_v62 = vrot.slane %v1081_v61, 2 }
 0x5d1   :  { %v1083_v63 = vadd.f32 %v1082_v62, %v1081_v61  ;;  %v1285_v61 = vld [vmem:[%s3361_s10 + $0x8] sm:$0xff] }
 0x5d2   :  { %v1368_v62 = vld [vmem:[%s3362_s11 + $0x8] sm:$0xff] }
 0x5d3   :  { %v1084_v0 = vrot.slane %v1083_v63, 1 }
 0x5d5   :  { %v1085_v56 = vadd.f32 %v1084_v0, %v1083_v63  ;;  %v2503_v0 = vpack.c.bf16 %v1546_v55, %v1545_v54 }
 0x5d7   :  { %v1086_v58 = vmul.f32 0.03125, %v1085_v56  ;;  %v1456_v56 = vld [vmem:[%s3363_s12 + $0x20] sm:$0xff] }
 0x5d9   :  { %2094 = vmatmul.mubr.f32.vlgmr.msra.gmra.mrb[16].mxu1 %v1086_v58  ;;  %v1457_v58 = vld [vmem:[%s3363_s12 + $0x28] sm:$0xff] }
 0x5da   :  { %2139 = vmatprep.mubr.msk.f32.mxu1 %vm144_vm0, %v1284_v24 }
 0x6ac   :  { %v1153_v59 = vpop.f32.mrb[16].mxu1 }
 0x6ad   :  { %v1160_v60 = vrot.slane %v1153_v59, %v2969_v57  ;;  %v2095_v1 = vpop.f32.mrb[17].mxu1  ;;  %v1547_v59 = vld [vmem:[%s3364_s13 + $0x20] sm:$0xff] }
 0x6ae   :  { %v2475_v1 = vpack.c.bf16 %v1457_v58, %v1456_v56 }
 0x6af   :  { %v1161_v2 = vsub.f32 %v1059_v46, %v1160_v60  ;;  %v1162_v3 = vsub.f32 %v1064_v44, %v1160_v60  ;;  %v1163_v4 = vsub.f32 %v1069_v34, %v1160_v60  ;;  %v1164_v10 = vsub.f32 %v1074_v51, %v1160_v60  ;;  %v1454_v51 = vld [vmem:[%s3363_s12 + $0x10] sm:$0xff]  ;;  %v1548_v60 = vld [vmem:[%s3364_s13 + $0x28] sm:$0xff] }
 0x6b0   :  { %v2499_v34 = vpack.c.bf16 %v1544_v49, %v1543_v31  ;;  %v2471_v63 = vpack.c.bf16 %v1455_v52, %v1454_v51 }
 0x6b1   :  { %v1165_v12 = vmul.f32 %v1161_v2, %v1161_v2  ;;  %v1166_v7 = vmul.f32 %v1162_v3, %v1162_v3  ;;  %v1167_v18 = vmul.f32 %v1163_v4, %v1163_v4  ;;  %v1168_v8 = vmul.f32 %v1164_v10, %v1164_v10 }
 0x6b3   :  { %v1169_v6 = vadd.f32 %v1166_v7, %v1165_v12  ;;  %v1550_v12 = vld [vmem:[%s3364_s13 + $0x38] sm:$0xff] }
 0x6b5   :  { %v1170_v11 = vadd.f32 %v1169_v6, %v1167_v18  ;;  %v1460_v6 = vld [vmem:[%s3363_s12 + $0x40] sm:$0xff] }
 0x6b7   :  { %v1171_v13 = vadd.f32 %v1170_v11, %v1168_v8  ;;  %v1461_v8 = vld [vmem:[%s3363_s12 + $0x48] sm:$0xff]  ;;  %v1551_v11 = vld [vmem:[%s3364_s13 + $0x40] sm:$0xff] }
 0x6b9   :  { %v1172_v9 = vrot.slane %v1171_v13, 4 }
 0x6bb   :  { %v1173_v16 = vadd.f32 %v1172_v9, %v1171_v13  ;;  %v1552_v13 = vld [vmem:[%s3364_s13 + $0x48] sm:$0xff]  ;;  %v2483_v9 = vpack.c.bf16 %v1461_v8, %v1460_v6 }
 0x6bd   :  { %v1174_v17 = vrot.slane %v1173_v16, 2 }
 0x6bf   :  { %v1175_v19 = vadd.f32 %v1174_v17, %v1173_v16  ;;  %v2515_v16 = vpack.c.bf16 %v1552_v13, %v1551_v11  ;;  %v1462_v17 = vld [vmem:[%s3363_s12 + $0x50] sm:$0xff] }
 0x6c1   :  { %v1176_v21 = vrot.slane %v1175_v19, 1 }
 0x6c3   :  { %v1177_v22 = vadd.f32 %v1176_v21, %v1175_v19  ;;  %v1463_v19 = vld [vmem:[%s3363_s12 + $0x58] sm:$0xff]  ;;  %v1553_v21 = vld [vmem:[%s3364_s13 + $0x50] sm:$0xff] }
 0x6c5   :  { %v1178_v5 = vmul.f32 0.03125, %v1177_v22  ;;  %v1554_v22 = vld [vmem:[%s3364_s13 + $0x58] sm:$0xff] }
 0x6c6   :  { %v2519_v24 = vpack.c.bf16 %v1554_v22, %v1553_v21 }
 0x6c7   :  { %2129 = vmatmul.mubr.f32.vlgmr.msra.gmra.mrb[24].mxu0 %v1178_v5  ;;  %v2487_v5 = vpack.c.bf16 %v1463_v19, %v1462_v17 }
 0x6c8   :  { %2150 = vmatprep.mubr.msk.f32.mxu0 %vm144_vm0, %v1367_v26  ;;  %v1464_v26 = vld [vmem:[%s3363_s12 + $0x60] sm:$0xff] }
 0x79a   :  { %v1245_v27 = vpop.f32.mrb[24].mxu0 }
 0x79b   :  { %v1246_v29 = vadd.f32 1e-05, %v1245_v27  ;;  %v2130_v30 = vpop.f32.mrb[25].mxu0  ;;  %v1465_v27 = vld [vmem:[%s3363_s12 + $0x68] sm:$0xff] }
 0x79c   :  { %v1556_v30 = vld [vmem:[%s3364_s13 + $0x68] sm:$0xff] }
 0x79d   :  { %2545 = vrsqrt.f32 %v1246_v29  ;;  %v1555_v29 = vld [vmem:[%s3364_s13 + $0x60] sm:$0xff] }
 0x7a7   :  { %v2546_v32 = vpop.eup %2545 }
 0x7a8   :  { %v1253_v33 = vrot.slane %v2546_v32, %v2969_v57  ;;  %v2491_v32 = vpack.c.bf16 %v1465_v27, %v1464_v26 }
 0x7aa   :  { %v1254_v37 = vmul.f32 %v1253_v33, %v1161_v2  ;;  %v1255_v38 = vmul.f32 %v1253_v33, %v1162_v3  ;;  %v1256_v39 = vmul.f32 %v1253_v33, %v1163_v4  ;;  %v1257_v40 = vmul.f32 %v1253_v33, %v1164_v10  ;;  %v1458_v3 = vld [vmem:[%s3363_s12 + $0x30] sm:$0xff]  ;;  %v1459_v4 = vld [vmem:[%s3363_s12 + $0x38] sm:$0xff] }
 0x7ab   :  { %v2507_v2 = vpack.c.bf16 %v1548_v60, %v1547_v59  ;;  %v1549_v10 = vld [vmem:[%s3364_s13 + $0x30] sm:$0xff]  ;;  %v2479_v7 = vpack.c.bf16 %v1459_v4, %v1458_v3  ;;  %v2523_v33 = vpack.c.bf16 %v1556_v30, %v1555_v29 }
 0x7ac   :  { %v1265_v15 = vmul.f32 %v1679_v36, %v1254_v37  ;;  %v1266_v20 = vmul.f32 %v1679_v36, %v1255_v38  ;;  %v1267_v23 = vmul.f32 %v1679_v36, %v1256_v39  ;;  %v1268_v25 = vmul.f32 %v1679_v36, %v1257_v40  ;;  %v1466_v36 = vld [vmem:[%s3363_s12 + $0x70] sm:$0xff]  ;;  %v1467_v37 = vld [vmem:[%s3363_s12 + $0x78] sm:$0xff]  ;;  %s2698_s12 = smov [#allocation11]  }
 0x7ad   :  { %v2511_v18 = vpack.c.bf16 %v1550_v12, %v1549_v10  ;;  %v1557_v38 = vld [vmem:[%s3364_s13 + $0x70] sm:$0xff]  ;;  %v2495_v39 = vpack.c.bf16 %v1467_v37, %v1466_v36  ;;  %v1558_v40 = vld [vmem:[%s3364_s13 + $0x78] sm:$0xff]  ;;  %s1643_s4 = sshll.u32 %s2698_s12, 4  ;;  %s1644_s4 = int_to_ptr.vmem [resolvable:$true] %s1643_s4 }
 0x7ae   :  { %v1276_v35 = vadd.f32 %v1680_v53, %v1265_v15  ;;  %v1277_v41 = vadd.f32 %v1680_v53, %v1266_v20  ;;  %v1278_v42 = vadd.f32 %v1680_v53, %v1267_v23  ;;  %v1279_v57 = vadd.f32 %v1680_v53, %v1268_v25  ;;  %s2657_s13 = scalar_lea.vmem %s1644_s4, 256  ;;  %p2662_p13 = scmp.lt.s32.totalorder %s1644_s4, %s1644_s4 }
 0x7af   :  { %v2527_v53 = vpack.c.bf16 %v1558_v40, %v1557_v38  ;;  %p2658_p12 = scmp.ne.s32.totalorder %s1644_s4, %s2657_s13  ;;  %p2663_p0 = scmp.lt.s32.totalorder %s2657_s13, %s2657_s13 }
 0x7b0   :  { %v1280_v43 = vmax.f32 %v1276_v35, 0.0  ;;  %v1281_v44 = vmax.f32 %v1277_v41, 0.0  ;;  %v1282_v45 = vmax.f32 %v1278_v42, 0.0  ;;  %v1283_v28 = vmax.f32 %v1279_v57, 0.0 }
 0x7b1   :  { %p2664_p1 = por %p2663_p0, %p2662_p13 }
 0x7b2   :  { %v2451_v46 = vpack.c.bf16 %v1281_v44, %v1280_v43  ;;  %v2455_v14 = vpack.c.bf16 %v1283_v28, %v1282_v45 }
 0x7b3   :  { %p2665_p2 = pnand %p2664_p1, %p2658_p12 }
 0x7b4   :  { %2452 = vmatprep.subr.bf16.mxu1 %v2451_v46  ;;  %2460 = vmatprep.subr.bf16.mxu0 %v2451_v46 }
 0x7b5   :  { %2454 = vmatpush3.bf16.msra.mxu1 %v2451_v46  ;;  %2462 = vmatpush3.bf16.msra.mxu0 %v2451_v46 }
 0x7b6   :  { %2456 = vmatprep.subr.bf16.mxu1 %v2455_v14  ;;  %2464 = vmatprep.subr.bf16.mxu0 %v2455_v14 }
 0x7b9   :  { %2458 = vmatpush3.bf16.msra.mxu1 %v2455_v14  ;;  %2466 = vmatpush3.bf16.msra.mxu0 %v2455_v14 }
 0x7ba   :  { %2468 = vmatprep.subr.bf16.mxu1 %v2467_v50  ;;  %2500 = vmatprep.subr.bf16.mxu0 %v2499_v34 }
 0x7bc   :  { %2140 = vmatmul.mubr.msk.f32.vlgmr.msra.gmra.mrb[18].mxu1 %vm144_vm0, %v1285_v61  ;;  %2151 = vmatmul.mubr.msk.f32.vlgmr.msra.gmra.mrb[26].mxu0 %vm144_vm0, %v1368_v62 }
 0x7bd   :  { %2470 = vmatpush3.bf16.msra.mxu1 %v2467_v50  ;;  %2502 = vmatpush3.bf16.msra.mxu0 %v2499_v34 }
 0x7be   :  { %2472 = vmatprep.subr.bf16.mxu1 %v2471_v63  ;;  %2504 = vmatprep.subr.bf16.mxu0 %v2503_v0 }
 0x7c1   :  { %2474 = vmatpush3.bf16.msra.mxu1 %v2471_v63  ;;  %2506 = vmatpush3.bf16.msra.mxu0 %v2503_v0 }
 0x7c2   :  { %2476 = vmatprep.subr.bf16.mxu1 %v2475_v1  ;;  %2508 = vmatprep.subr.bf16.mxu0 %v2507_v2 }
 0x7c5   :  { %2478 = vmatpush3.bf16.msra.mxu1 %v2475_v1  ;;  %2510 = vmatpush3.bf16.msra.mxu0 %v2507_v2 }
 0x7c6   :  { %2480 = vmatprep.subr.bf16.mxu1 %v2479_v7  ;;  %2512 = vmatprep.subr.bf16.mxu0 %v2511_v18 }
 0x7c9   :  { %2482 = vmatpush3.bf16.msra.mxu1 %v2479_v7  ;;  %2514 = vmatpush3.bf16.msra.mxu0 %v2511_v18 }
 0x7ca   :  { %2484 = vmatprep.subr.bf16.mxu1 %v2483_v9  ;;  %2516 = vmatprep.subr.bf16.mxu0 %v2515_v16 }
 0x7cd   :  { %2486 = vmatpush3.bf16.msra.mxu1 %v2483_v9  ;;  %2518 = vmatpush3.bf16.msra.mxu0 %v2515_v16 }
 0x7ce   :  { %2488 = vmatprep.subr.bf16.mxu1 %v2487_v5  ;;  %2520 = vmatprep.subr.bf16.mxu0 %v2519_v24 }
 0x7d1   :  { %2490 = vmatpush3.bf16.msra.mxu1 %v2487_v5  ;;  %2522 = vmatpush3.bf16.msra.mxu0 %v2519_v24 }
 0x7d2   :  { %2492 = vmatprep.subr.bf16.mxu1 %v2491_v32  ;;  %2524 = vmatprep.subr.bf16.mxu0 %v2523_v33 }
 0x7d5   :  { %2494 = vmatpush3.bf16.msra.mxu1 %v2491_v32  ;;  %2526 = vmatpush3.bf16.msra.mxu0 %v2523_v33 }
 0x7d6   :  { %2496 = vmatprep.subr.bf16.mxu1 %v2495_v39  ;;  %2528 = vmatprep.subr.bf16.mxu0 %v2527_v53 }
 0x7d9   :  { %2498 = vmatpush3.bf16.msra.mxu1 %v2495_v39  ;;  %2530 = vmatpush3.bf16.msra.mxu0 %v2527_v53 }
 0x88f   :  { %v2141_v15 = vpop.f32.mrb[18].mxu1  ;;  %v2152_v20 = vpop.f32.mrb[26].mxu0 }
 0x890   :  { %v1451_v23 = vmax.f32 %v2141_v15, %v2152_v20  ;;  %v1358_v25 = vpop.f32.mrb[19].mxu1  ;;  %v1441_v35 = vpop.f32.mrb[27].mxu0 }
 0x891   :  { %v1450_v41 = vmax.f32 %v1358_v25, %v1441_v35 }
 0x893   :  { %2185 = vmatprep.mubr.f32.mxu1 %v1450_v41  ;;  %2220 = vmatprep.mubr.f32.mxu0 %v1450_v41 }
 0x894   :  { %2186 = vmatmul.mubr.f32.vlgmr.msra.gmra.mrb[20].mxu1 %v1451_v23  ;;  %2221 = vmatmul.mubr.f32.vlgmr.msra.gmra.mrb[28].mxu0 %v1451_v23 }
 0x967   :  { %v2187_v42 = vpop.f32.mrb[20].mxu1  ;;  %v2222_v57 = vpop.f32.mrb[28].mxu0 }
 0x968   :  { %v1635_v43 = vmax.f32 %v2187_v42, %v2222_v57  ;;  %v1534_v44 = vpop.f32.mrb[21].mxu1  ;;  %v1625_v45 = vpop.f32.mrb[29].mxu0 }
 0x969   :  { %v1634_v28 = vmax.f32 %v1534_v44, %v1625_v45 }
 0x96a   :  { %1637 = vst.msk [vmem:[#allocation11 + $0x8] sm:$0xff] %vm355_vm1, %v1635_v43 }
 0x96b   :  { %1636 = vst.msk [vmem:[#allocation11] sm:$0xff] %vm355_vm1, %v1634_v28 }
 0x96c   :  { %2668 = shalt.err (!%p2665_p2)
}
 0x96d   :  { %s2669_s18 = scalar_lea.hbm %s3365_s14, 256 }
 0x96e   :  { %p2670_p3 = scmp.ne.s32.totalorder %s3365_s14, %s2669_s18  ;;  %p2673_p4 = scmp.lt.u32.totalorder %s2669_s18, %s3365_s14 }
 0x970   :  { %p2675_p5 = pnand %p2673_p4, %p2670_p3 }
 0x972   :  { %2678 = shalt.err (!%p2675_p5)
}
 0x973   :  { %1649 = dma.vmem_to_hbm [thread:$0]  %s1644_s4, 256, %s3365_s14, [#allocation4], %s2689_s25, %s2689_s25, %s2690_s26  }
 0x974   :  { %2685 = dma.done.wait [#allocation4], 256  }
 0x975   :  { %2686 = vsyncadd [#allocation4], 4294967040 }
 0x976   :  { %1653 = vsyncpa [#allocation3], 1 }
 0x977   :  { %1654 = vsyncpa [#allocation6], 1 }
 0x978   :  { %1655 = vsyncpa [#allocation9], 1 }
 0x979   :  { %1656 = vsyncpa [#allocation4], 1 }

</bundles_post_ra>
